<compile_context>
chip_gen: v7x
topology: tpu7x:2x2x1
jax: 0.10.0
libtpu: 0.0.40
codegen_flags: <defaults>
</compile_context>

<pallas_src>
import functools
import math

import jax
import jax.numpy as jnp
import numpy as np
from jax.experimental import pallas as pl
from jax.experimental.pallas import tpu as pltpu


# -----------------------------------------------------------------------------
# Fused kernel: pool -> cheb1 + bias -> BN + ReLU -> cheb2 + bias
# -----------------------------------------------------------------------------
def _fused_kernel(x_ref, lap_ref, w1_ref, w2_ref, bn1_ref, b2_ref, o_ref, *,
                  B, V, pool, Cin, Cmid, Cout_p, K, eps):
    # x_ref  : (pool, V, B*Cin)   f32   pooling slabs, lane index = (b, c)
    # lap_ref: (V, V)             cdt   rescaled graph Laplacian
    # w1_ref : (K, Cin,  Cmid)    cdt   dense per-order weights (torch-reindexed)
    # w2_ref : (K, Cmid, Cout_p)  cdt   (output channels zero-padded to Cout_p)
    # bn1_ref: (3, Cmid)          f32   rows = [conv1 bias, bn gamma, bn beta]
    # b2_ref : (1, Cout_p)        f32
    # o_ref  : (V, B*Cout_p)      f32
    cdt = lap_ref.dtype                       # MXU operand dtype (f32 or bf16)
    lap = lap_ref[...]

    # --- Healpix max pooling: elementwise max over `pool` slabs (VPU only) ---
    x0 = x_ref[0]
    for p in range(1, pool):
        x0 = jnp.maximum(x0, x_ref[p])                        # (V, B*Cin) f32

    def cheb_layer(x_wide, w_ref, bias_row, cin, cout):
        """Chebyshev conv.  Recursion runs on the wide (V, B*cin) operand (one
        wide MXU matmul per order, f32 accumulation / f32 carries); then each
        (order, batch) pair is a dense (V, cin) x (cin, cout) matmul accumulated
        in f32.  Returns a list of B blocks of shape (V, cout), bias added."""
        terms = [x_wide]                                      # f32 carries
        if K > 1:
            x1 = jnp.dot(lap, x_wide.astype(cdt),
                         preferred_element_type=jnp.float32)
            terms.append(x1)
            xp, xc = x_wide, x1
            for _ in range(2, K):
                xn = 2.0 * jnp.dot(lap, xc.astype(cdt),
                                   preferred_element_type=jnp.float32) - xp
                terms.append(xn)
                xp, xc = xc, xn

        ws = [w_ref[k] for k in range(K)]                     # (cin, cout) each
        blocks = []
        for b in range(B):
            sl = slice(b * cin, (b + 1) * cin)
            acc = jnp.dot(terms[0][:, sl].astype(cdt), ws[0],
                          preferred_element_type=jnp.float32)
            for k in range(1, K):
                acc = acc + jnp.dot(terms[k][:, sl].astype(cdt), ws[k],
                                    preferred_element_type=jnp.float32)
            blocks.append(acc + bias_row)                     # (V, cout) f32
        return blocks

    bn1 = bn1_ref[...]                                        # (3, Cmid) f32
    b1_row, gamma_row, beta_row = bn1[0:1, :], bn1[1:2, :], bn1[2:3, :]

    # --- layer 1: ChebConv(in -> mid) + bias ---------------------------------
    y_blocks = cheb_layer(x0, w1_ref, b1_row, Cin, Cmid)      # B x (V, Cmid)

    # --- BatchNorm1d (training-mode batch statistics) + ReLU -----------------
    cnt = float(V * B)
    rowsum = y_blocks[0].sum(axis=0, keepdims=True)
    for b in range(1, B):
        rowsum = rowsum + y_blocks[b].sum(axis=0, keepdims=True)
    mean = rowsum / cnt                                       # (1, Cmid)
    sqsum = ((y_blocks[0] - mean) ** 2).sum(axis=0, keepdims=True)
    for b in range(1, B):
        sqsum = sqsum + ((y_blocks[b] - mean) ** 2).sum(axis=0, keepdims=True)
    var = sqsum / cnt                                         # biased variance
    scale = gamma_row * jax.lax.rsqrt(var + eps)              # (1, Cmid)
    z_blocks = [jnp.maximum((yb - mean) * scale + beta_row, 0.0)
                for yb in y_blocks]                           # B x (V, Cmid)
    z_wide = jnp.concatenate(z_blocks, axis=-1) if B > 1 else z_blocks[0]

    # --- layer 2: ChebConv(mid -> out) + bias --------------------------------
    b2_row = b2_ref[...]                                      # (1, Cout_p)
    out_blocks = cheb_layer(z_wide, w2_ref, b2_row, Cmid, Cout_p)
    out_wide = jnp.concatenate(out_blocks, axis=-1) if B > 1 else out_blocks[0]
    o_ref[...] = out_wide                                     # (V, B*Cout_p)
    # TODO(synk): BatchNorm1d running_mean/running_var updates are a training
    # side effect and do not affect this forward output; not materialized here.
    # (PyTorch would store the UNBIASED variance in running_var.)


# -----------------------------------------------------------------------------
# Wrapper helpers
# -----------------------------------------------------------------------------
def _round_up(x, m):
    return -(-x // m) * m


def _padded_tile_bytes(shape, dtype):
    """Rough VMEM footprint of one resident copy: pad last two dims to (8,128)."""
    shape = tuple(int(s) for s in shape)
    if len(shape) == 1:
        shape = (1,) + shape
    lead = 1
    for s in shape[:-2]:
        lead *= s
    return (lead * _round_up(shape[-2], 8) * _round_up(shape[-1], 128)
            * np.dtype(dtype).itemsize)


def _reindex_weight(weight):
    """Reproduce torch's weight.view(Fin*K, Fout) pairing: input column
    (fin*K + k) multiplies flat weight row (fin*K + k).  Returns
    W_eff[k, fin, fout] so that  out = sum_k (T_k x) @ W_eff[k]  matches torch."""
    K, Fin, Fout = weight.shape
    w_flat = weight.reshape(K * Fin, Fout)
    idx = jnp.arange(Fin)[None, :] * K + jnp.arange(K)[:, None]   # (K, Fin)
    return w_flat[idx]                                            # (K, Fin, Fout)


# -----------------------------------------------------------------------------
# Full module forward
# -----------------------------------------------------------------------------
def spherical_cheb_bn_pool_cheb(x, lap, w1, b1, gamma, beta, w2, b2, *,
                                pool, eps=1e-5, compute_dtype=jnp.float32):
    B, Vin, Cin = (int(s) for s in x.shape)
    V = Vin // pool
    K, _, Cmid = (int(s) for s in w1.shape)
    K2, _, Cout = (int(s) for s in w2.shape)
    assert K2 == K

    # Pad output channels so B*Cout_p is a multiple of 128 -> lane-dense stores.
    unit = 128 // math.gcd(B, 128)
    Cout_p = _round_up(Cout, unit)

    # Layout plumbing: (B, Vin, Cin) -> (pool, V, B*Cin) pooling slabs.
    # TODO(synk): at production sizes fold this into the kernel's input DMA
    # (pool grid axis / index_map) to avoid the extra HBM pass.
    x_arr = jnp.transpose(x.reshape(B, V, pool, Cin), (2, 1, 0, 3))
    x_arr = x_arr.reshape(pool, V, B * Cin).astype(jnp.float32)

    lap_c = lap.astype(compute_dtype)                             # (V, V)
    w1_eff = _reindex_weight(w1).astype(compute_dtype)            # (K, Cin, Cmid)
    w2_eff = _reindex_weight(w2)                                  # (K, Cmid, Cout)
    w2_eff = jnp.pad(w2_eff, ((0, 0), (0, 0), (0, Cout_p - Cout)))
    w2_eff = w2_eff.astype(compute_dtype)                         # (K, Cmid, Cout_p)
    bn1 = jnp.stack([b1, gamma, beta]).astype(jnp.float32)        # (3, Cmid)
    b2_p = jnp.pad(b2, (0, Cout_p - Cout)).reshape(1, Cout_p).astype(jnp.float32)

    kernel = functools.partial(_fused_kernel, B=B, V=V, pool=pool, Cin=Cin,
                               Cmid=Cmid, Cout_p=Cout_p, K=K, eps=eps)

    # Real FLOPs: dense weights, no block-diagonal zero padding counted.
    flops = (2 * (K - 1) * V * V * B * Cin          # layer-1 Chebyshev recursion
             + 2 * V * B * K * Cin * Cmid           # layer-1 weight matmuls
             + 2 * (K - 1) * V * V * B * Cmid       # layer-2 Chebyshev recursion
             + 2 * V * B * K * Cmid * Cout_p)       # layer-2 weight matmuls
    operands = [x_arr, lap_c, w1_eff, w2_eff, bn1, b2_p]
    out_bytes = V * B * Cout_p * 4
    bytes_accessed = int(sum(a.size * a.dtype.itemsize for a in operands)
                         + out_bytes)

    # VMEM budget: operand + working-set footprint (8,128-padded) + headroom,
    # instead of blanket-requesting the full 64 MiB.
    cmax = max(Cin, Cmid, Cout_p)
    working = ((K + 3) * _padded_tile_bytes((V, B * cmax), jnp.float32)
               + (B + 2) * _padded_tile_bytes((V, cmax), jnp.float32))
    operand_bytes = (sum(_padded_tile_bytes(a.shape, a.dtype) for a in operands)
                     + _padded_tile_bytes((V, B * Cout_p), jnp.float32))
    vmem_limit = int(min(48 * 1024 * 1024,
                         max(4 * 1024 * 1024,
                             2 * (operand_bytes + working) + 2 * 1024 * 1024)))

    vmem = pl.BlockSpec(memory_space=pltpu.MemorySpace.VMEM)
    out = pl.pallas_call(
        kernel,
        out_shape=jax.ShapeDtypeStruct((V, B * Cout_p), jnp.float32),
        in_specs=[vmem] * len(operands),
        out_specs=vmem,
        compiler_params=pltpu.CompilerParams(vmem_limit_bytes=vmem_limit),
        cost_estimate=pl.CostEstimate(flops=flops, transcendentals=Cmid,
                                      bytes_accessed=bytes_accessed),
    )(*operands)

    # (V, B*Cout_p) -> (B, V, Cout), dropping the channel padding.
    out = out.reshape(V, B, Cout_p)[:, :, :Cout]
    return jnp.transpose(out, (1, 0, 2))


# -----------------------------------------------------------------------------
# Pure-JAX reference (mirrors the PyTorch code, including the weight.view quirk)
# -----------------------------------------------------------------------------
def _cheb_conv_ref(lap, inputs, weight):
    B, V, Fin = inputs.shape
    K, _, Fout = weight.shape
    x0 = jnp.transpose(inputs, (1, 2, 0)).reshape(V, Fin * B)
    xs = [x0]
    if K > 1:
        x1 = lap @ x0
        xs.append(x1)
        for _ in range(1, K - 1):
            x2 = 2.0 * (lap @ x1) - x0
            xs.append(x2)
            x0, x1 = x1, x2
    stk = jnp.stack(xs).reshape(K, V, Fin, B)
    stk = jnp.transpose(stk, (3, 1, 2, 0)).reshape(B * V, Fin * K)
    out = stk @ weight.reshape(Fin * K, Fout)
    return out.reshape(B, V, Fout)


def _reference(x, lap, w1, b1, gamma, beta, w2, b2, *, pool, eps=1e-5):
    B, Vin, Cin = x.shape
    V = Vin // pool
    xp = x.reshape(B, V, pool, Cin).max(axis=2)           # MaxPool1d over vertices
    y = _cheb_conv_ref(lap, xp, w1) + b1
    mean = y.mean(axis=(0, 1), keepdims=True)
    var = ((y - mean) ** 2).mean(axis=(0, 1), keepdims=True)
    y = (y - mean) / jnp.sqrt(var + eps) * gamma + beta
    y = jnp.maximum(y, 0.0)
    y = _cheb_conv_ref(lap, y, w2) + b2
    return y


# -----------------------------------------------------------------------------
if __name__ == "__main__":
    B = 2          # batch
    Vin = 64       # input vertices
    pool = 4       # Healpix max-pool factor
    V = Vin // pool
    Cin, Cmid, Cout = 4, 8, 6
    K = 3          # Chebyshev kernel size

    key = jax.random.PRNGKey(0)
    kx, kl, kw1, kw2 = jax.random.split(key, 4)

    x = jax.random.normal(kx, (B, Vin, Cin), dtype=jnp.float32)

    # Deterministic dense "laplacian" at the pooled resolution (V x V).
    A = jax.random.uniform(kl, (V, V), dtype=jnp.float32)
    A = 0.5 * (A + A.T)
    A = A * (A > 0.6)
    A = A - jnp.diag(jnp.diag(A))
    deg = A.sum(axis=1)
    L = jnp.diag(deg) - A
    lap = (2.0 * L / jnp.maximum(deg.max(), 1.0)
           - jnp.eye(V, dtype=jnp.float32)).astype(jnp.float32)

    # ChebConv kaiming init: normal(0, sqrt(2/(in_channels*K))), bias = 0.01
    std1 = float(np.sqrt(2.0 / (Cin * K)))
    std2 = float(np.sqrt(2.0 / (Cmid * K)))
    w1 = jax.random.normal(kw1, (K, Cin, Cmid), dtype=jnp.float32) * std1
    b1 = jnp.full((Cmid,), 0.01, dtype=jnp.float32)
    w2 = jax.random.normal(kw2, (K, Cmid, Cout), dtype=jnp.float32) * std2
    b2 = jnp.full((Cout,), 0.01, dtype=jnp.float32)

    # BatchNorm1d params (default init)
    gamma = jnp.ones((Cmid,), dtype=jnp.float32)
    beta = jnp.zeros((Cmid,), dtype=jnp.float32)

    ref = np.asarray(jax.block_until_ready(
        _reference(x, lap, w1, b1, gamma, beta, w2, b2, pool=pool)))

    # Exact path (f32 MXU operands) -- matches PyTorch forward to float tol.
    out = spherical_cheb_bn_pool_cheb(x, lap, w1, b1, gamma, beta, w2, b2,
                                      pool=pool)
    out = np.asarray(jax.block_until_ready(out))
    assert out.shape == (B, V, Cout)
    np.testing.assert_allclose(out, ref, rtol=1e-4, atol=1e-4)

    # Fast path (bf16 MXU operands, f32 accumulation) -- the v6e/v7x perf
    # option from the review; sanity-checked with a loose tolerance.
    out_bf16 = spherical_cheb_bn_pool_cheb(x, lap, w1, b1, gamma, beta, w2, b2,
                                           pool=pool,
                                           compute_dtype=jnp.bfloat16)
    out_bf16 = np.asarray(jax.block_until_ready(out_bf16))
    assert out_bf16.shape == (B, V, Cout)
    max_err = float(np.max(np.abs(out_bf16 - ref)))
    assert max_err <= 0.1 * float(np.max(np.abs(ref))) + 0.05, max_err

    print("KERNEL_OK")
</pallas_src>

<mosaic_0001>
module attributes {stable_mosaic.version = 11 : i64} {
  func.func @_fused_kernel(%arg0: memref<4x16x8xf32, #tpu.memory_space<vmem>>, %arg1: memref<16x16xf32, #tpu.memory_space<vmem>>, %arg2: memref<3x4x8xf32, #tpu.memory_space<vmem>>, %arg3: memref<3x8x64xf32, #tpu.memory_space<vmem>>, %arg4: memref<3x8xf32, #tpu.memory_space<vmem>>, %arg5: memref<1x64xf32, #tpu.memory_space<vmem>>, %arg6: memref<16x128xf32, #tpu.memory_space<vmem>>) attributes {dimension_semantics = [], scalar_prefetch = 0 : i64, scratch_operands = 0 : i64, tpu.core_type = #tpu.core_type<tc>} {
    %c0 = arith.constant 0 : index
    %c0_0 = arith.constant 0 : index
    %0 = vector.load %arg1[%c0, %c0_0] : memref<16x16xf32, #tpu.memory_space<vmem>>, vector<16x16xf32>
    %c0_1 = arith.constant 0 : index
    %c0_2 = arith.constant 0 : index
    %c0_3 = arith.constant 0 : index
    %1 = vector.load %arg0[%c0_1, %c0_2, %c0_3] : memref<4x16x8xf32, #tpu.memory_space<vmem>>, vector<1x16x8xf32>
    %2 = vector.shape_cast %1 : vector<1x16x8xf32> to vector<16x8xf32>
    %c1 = arith.constant 1 : index
    %c0_4 = arith.constant 0 : index
    %c0_5 = arith.constant 0 : index
    %3 = vector.load %arg0[%c1, %c0_4, %c0_5] : memref<4x16x8xf32, #tpu.memory_space<vmem>>, vector<1x16x8xf32>
    %4 = vector.shape_cast %3 : vector<1x16x8xf32> to vector<16x8xf32>
    %5 = arith.maximumf %2, %4 : vector<16x8xf32>
    %c2 = arith.constant 2 : index
    %c0_6 = arith.constant 0 : index
    %c0_7 = arith.constant 0 : index
    %6 = vector.load %arg0[%c2, %c0_6, %c0_7] : memref<4x16x8xf32, #tpu.memory_space<vmem>>, vector<1x16x8xf32>
    %7 = vector.shape_cast %6 : vector<1x16x8xf32> to vector<16x8xf32>
    %8 = arith.maximumf %5, %7 : vector<16x8xf32>
    %c3 = arith.constant 3 : index
    %c0_8 = arith.constant 0 : index
    %c0_9 = arith.constant 0 : index
    %9 = vector.load %arg0[%c3, %c0_8, %c0_9] : memref<4x16x8xf32, #tpu.memory_space<vmem>>, vector<1x16x8xf32>
    %10 = vector.shape_cast %9 : vector<1x16x8xf32> to vector<16x8xf32>
    %11 = arith.maximumf %8, %10 : vector<16x8xf32>
    %c0_10 = arith.constant 0 : index
    %c0_11 = arith.constant 0 : index
    %12 = vector.load %arg4[%c0_10, %c0_11] : memref<3x8xf32, #tpu.memory_space<vmem>>, vector<3x8xf32>
    %13 = vector.extract_strided_slice %12 {offsets = [0, 0], sizes = [1, 8], strides = [1, 1]} : vector<3x8xf32> to vector<1x8xf32>
    %14 = vector.extract_strided_slice %12 {offsets = [1, 0], sizes = [1, 8], strides = [1, 1]} : vector<3x8xf32> to vector<1x8xf32>
    %15 = vector.extract_strided_slice %12 {offsets = [2, 0], sizes = [1, 8], strides = [1, 1]} : vector<3x8xf32> to vector<1x8xf32>
    %cst = arith.constant dense<0.000000e+00> : vector<16x8xf32>
    %16 = tpu.matmul %0, %11, %cst {dimension_numbers = #tpu.dot_dimension_numbers<[1], [0], [0], [1], [0, 0, 1, 1], [], []>} : vector<16x16xf32>, vector<16x8xf32>, vector<16x8xf32> -> vector<16x8xf32>
    %cst_12 = arith.constant dense<0.000000e+00> : vector<16x8xf32>
    %17 = tpu.matmul %0, %16, %cst_12 {dimension_numbers = #tpu.dot_dimension_numbers<[1], [0], [0], [1], [0, 0, 1, 1], [], []>} : vector<16x16xf32>, vector<16x8xf32>, vector<16x8xf32> -> vector<16x8xf32>
    %cst_13 = arith.constant 2.000000e+00 : f32
    %18 = vector.broadcast %cst_13 : f32 to vector<16x8xf32>
    %19 = arith.mulf %18, %17 : vector<16x8xf32>
    %20 = arith.subf %19, %11 : vector<16x8xf32>
    %c0_14 = arith.constant 0 : index
    %c0_15 = arith.constant 0 : index
    %c0_16 = arith.constant 0 : index
    %21 = vector.load %arg2[%c0_14, %c0_15, %c0_16] : memref<3x4x8xf32, #tpu.memory_space<vmem>>, vector<1x4x8xf32>
    %22 = vector.shape_cast %21 : vector<1x4x8xf32> to vector<4x8xf32>
    %c1_17 = arith.constant 1 : index
    %c0_18 = arith.constant 0 : index
    %c0_19 = arith.constant 0 : index
    %23 = vector.load %arg2[%c1_17, %c0_18, %c0_19] : memref<3x4x8xf32, #tpu.memory_space<vmem>>, vector<1x4x8xf32>
    %24 = vector.shape_cast %23 : vector<1x4x8xf32> to vector<4x8xf32>
    %c2_20 = arith.constant 2 : index
    %c0_21 = arith.constant 0 : index
    %c0_22 = arith.constant 0 : index
    %25 = vector.load %arg2[%c2_20, %c0_21, %c0_22] : memref<3x4x8xf32, #tpu.memory_space<vmem>>, vector<1x4x8xf32>
    %26 = vector.shape_cast %25 : vector<1x4x8xf32> to vector<4x8xf32>
    %27 = vector.extract_strided_slice %11 {offsets = [0, 0], sizes = [16, 4], strides = [1, 1]} : vector<16x8xf32> to vector<16x4xf32>
    %cst_23 = arith.constant dense<0.000000e+00> : vector<16x8xf32>
    %28 = tpu.matmul %27, %22, %cst_23 {dimension_numbers = #tpu.dot_dimension_numbers<[1], [0], [0], [1], [0, 0, 1, 1], [], []>} : vector<16x4xf32>, vector<4x8xf32>, vector<16x8xf32> -> vector<16x8xf32>
    %29 = vector.extract_strided_slice %16 {offsets = [0, 0], sizes = [16, 4], strides = [1, 1]} : vector<16x8xf32> to vector<16x4xf32>
    %cst_24 = arith.constant dense<0.000000e+00> : vector<16x8xf32>
    %30 = tpu.matmul %29, %24, %cst_24 {dimension_numbers = #tpu.dot_dimension_numbers<[1], [0], [0], [1], [0, 0, 1, 1], [], []>} : vector<16x4xf32>, vector<4x8xf32>, vector<16x8xf32> -> vector<16x8xf32>
    %31 = arith.addf %28, %30 : vector<16x8xf32>
    %32 = vector.extract_strided_slice %20 {offsets = [0, 0], sizes = [16, 4], strides = [1, 1]} : vector<16x8xf32> to vector<16x4xf32>
    %cst_25 = arith.constant dense<0.000000e+00> : vector<16x8xf32>
    %33 = tpu.matmul %32, %26, %cst_25 {dimension_numbers = #tpu.dot_dimension_numbers<[1], [0], [0], [1], [0, 0, 1, 1], [], []>} : vector<16x4xf32>, vector<4x8xf32>, vector<16x8xf32> -> vector<16x8xf32>
    %34 = arith.addf %31, %33 : vector<16x8xf32>
    %35 = vector.broadcast %13 : vector<1x8xf32> to vector<16x8xf32>
    %36 = arith.addf %34, %35 : vector<16x8xf32>
    %37 = vector.extract_strided_slice %11 {offsets = [0, 4], sizes = [16, 4], strides = [1, 1]} : vector<16x8xf32> to vector<16x4xf32>
    %cst_26 = arith.constant dense<0.000000e+00> : vector<16x8xf32>
    %38 = tpu.matmul %37, %22, %cst_26 {dimension_numbers = #tpu.dot_dimension_numbers<[1], [0], [0], [1], [0, 0, 1, 1], [], []>} : vector<16x4xf32>, vector<4x8xf32>, vector<16x8xf32> -> vector<16x8xf32>
    %39 = vector.extract_strided_slice %16 {offsets = [0, 4], sizes = [16, 4], strides = [1, 1]} : vector<16x8xf32> to vector<16x4xf32>
    %cst_27 = arith.constant dense<0.000000e+00> : vector<16x8xf32>
    %40 = tpu.matmul %39, %24, %cst_27 {dimension_numbers = #tpu.dot_dimension_numbers<[1], [0], [0], [1], [0, 0, 1, 1], [], []>} : vector<16x4xf32>, vector<4x8xf32>, vector<16x8xf32> -> vector<16x8xf32>
    %41 = arith.addf %38, %40 : vector<16x8xf32>
    %42 = vector.extract_strided_slice %20 {offsets = [0, 4], sizes = [16, 4], strides = [1, 1]} : vector<16x8xf32> to vector<16x4xf32>
    %cst_28 = arith.constant dense<0.000000e+00> : vector<16x8xf32>
    %43 = tpu.matmul %42, %26, %cst_28 {dimension_numbers = #tpu.dot_dimension_numbers<[1], [0], [0], [1], [0, 0, 1, 1], [], []>} : vector<16x4xf32>, vector<4x8xf32>, vector<16x8xf32> -> vector<16x8xf32>
    %44 = arith.addf %41, %43 : vector<16x8xf32>
    %45 = vector.broadcast %13 : vector<1x8xf32> to vector<16x8xf32>
    %46 = arith.addf %44, %45 : vector<16x8xf32>
    %cst_29 = arith.constant dense<0.000000e+00> : vector<8xf32>
    %47 = vector.multi_reduction <add>, %36, %cst_29 [0] : vector<16x8xf32> to vector<8xf32>
    %48 = vector.shape_cast %47 : vector<8xf32> to vector<1x8xf32>
    %cst_30 = arith.constant dense<0.000000e+00> : vector<8xf32>
    %49 = vector.multi_reduction <add>, %46, %cst_30 [0] : vector<16x8xf32> to vector<8xf32>
    %50 = vector.shape_cast %49 : vector<8xf32> to vector<1x8xf32>
    %51 = arith.addf %48, %50 : vector<1x8xf32>
    %cst_31 = arith.constant 3.200000e+01 : f32
    %52 = vector.broadcast %cst_31 : f32 to vector<1x8xf32>
    %53 = arith.divf %51, %52 : vector<1x8xf32>
    %54 = vector.broadcast %53 : vector<1x8xf32> to vector<16x8xf32>
    %55 = arith.subf %36, %54 : vector<16x8xf32>
    %56 = arith.mulf %55, %55 : vector<16x8xf32>
    %cst_32 = arith.constant dense<0.000000e+00> : vector<8xf32>
    %57 = vector.multi_reduction <add>, %56, %cst_32 [0] : vector<16x8xf32> to vector<8xf32>
    %58 = vector.shape_cast %57 : vector<8xf32> to vector<1x8xf32>
    %59 = vector.broadcast %53 : vector<1x8xf32> to vector<16x8xf32>
    %60 = arith.subf %46, %59 : vector<16x8xf32>
    %61 = arith.mulf %60, %60 : vector<16x8xf32>
    %cst_33 = arith.constant dense<0.000000e+00> : vector<8xf32>
    %62 = vector.multi_reduction <add>, %61, %cst_33 [0] : vector<16x8xf32> to vector<8xf32>
    %63 = vector.shape_cast %62 : vector<8xf32> to vector<1x8xf32>
    %64 = arith.addf %58, %63 : vector<1x8xf32>
    %cst_34 = arith.constant 3.200000e+01 : f32
    %65 = vector.broadcast %cst_34 : f32 to vector<1x8xf32>
    %66 = arith.divf %64, %65 : vector<1x8xf32>
    %cst_35 = arith.constant 9.99999974E-6 : f32
    %67 = vector.broadcast %cst_35 : f32 to vector<1x8xf32>
    %68 = arith.addf %66, %67 : vector<1x8xf32>
    %69 = math.rsqrt %68 : vector<1x8xf32>
    %70 = arith.mulf %14, %69 : vector<1x8xf32>
    %71 = vector.broadcast %53 : vector<1x8xf32> to vector<16x8xf32>
    %72 = arith.subf %36, %71 : vector<16x8xf32>
    %73 = vector.broadcast %70 : vector<1x8xf32> to vector<16x8xf32>
    %74 = arith.mulf %72, %73 : vector<16x8xf32>
    %75 = vector.broadcast %15 : vector<1x8xf32> to vector<16x8xf32>
    %76 = arith.addf %74, %75 : vector<16x8xf32>
    %cst_36 = arith.constant 0.000000e+00 : f32
    %77 = vector.broadcast %cst_36 : f32 to vector<16x8xf32>
    %78 = arith.maximumf %76, %77 : vector<16x8xf32>
    %79 = vector.broadcast %53 : vector<1x8xf32> to vector<16x8xf32>
    %80 = arith.subf %46, %79 : vector<16x8xf32>
    %81 = vector.broadcast %70 : vector<1x8xf32> to vector<16x8xf32>
    %82 = arith.mulf %80, %81 : vector<16x8xf32>
    %83 = vector.broadcast %15 : vector<1x8xf32> to vector<16x8xf32>
    %84 = arith.addf %82, %83 : vector<16x8xf32>
    %cst_37 = arith.constant 0.000000e+00 : f32
    %85 = vector.broadcast %cst_37 : f32 to vector<16x8xf32>
    %86 = arith.maximumf %84, %85 : vector<16x8xf32>
    %87 = tpu.concatenate %78, %86 in 1 : vector<16x8xf32>, vector<16x8xf32> -> vector<16x16xf32>
    %c0_38 = arith.constant 0 : index
    %c0_39 = arith.constant 0 : index
    %88 = vector.load %arg5[%c0_38, %c0_39] : memref<1x64xf32, #tpu.memory_space<vmem>>, vector<1x64xf32>
    %cst_40 = arith.constant dense<0.000000e+00> : vector<16x16xf32>
    %89 = tpu.matmul %0, %87, %cst_40 {dimension_numbers = #tpu.dot_dimension_numbers<[1], [0], [0], [1], [0, 0, 1, 1], [], []>} : vector<16x16xf32>, vector<16x16xf32>, vector<16x16xf32> -> vector<16x16xf32>
    %cst_41 = arith.constant dense<0.000000e+00> : vector<16x16xf32>
    %90 = tpu.matmul %0, %89, %cst_41 {dimension_numbers = #tpu.dot_dimension_numbers<[1], [0], [0], [1], [0, 0, 1, 1], [], []>} : vector<16x16xf32>, vector<16x16xf32>, vector<16x16xf32> -> vector<16x16xf32>
    %cst_42 = arith.constant 2.000000e+00 : f32
    %91 = vector.broadcast %cst_42 : f32 to vector<16x16xf32>
    %92 = arith.mulf %91, %90 : vector<16x16xf32>
    %93 = arith.subf %92, %87 : vector<16x16xf32>
    %c0_43 = arith.constant 0 : index
    %c0_44 = arith.constant 0 : index
    %c0_45 = arith.constant 0 : index
    %94 = vector.load %arg3[%c0_43, %c0_44, %c0_45] : memref<3x8x64xf32, #tpu.memory_space<vmem>>, vector<1x8x64xf32>
    %95 = vector.shape_cast %94 : vector<1x8x64xf32> to vector<8x64xf32>
    %c1_46 = arith.constant 1 : index
    %c0_47 = arith.constant 0 : index
    %c0_48 = arith.constant 0 : index
    %96 = vector.load %arg3[%c1_46, %c0_47, %c0_48] : memref<3x8x64xf32, #tpu.memory_space<vmem>>, vector<1x8x64xf32>
    %97 = vector.shape_cast %96 : vector<1x8x64xf32> to vector<8x64xf32>
    %c2_49 = arith.constant 2 : index
    %c0_50 = arith.constant 0 : index
    %c0_51 = arith.constant 0 : index
    %98 = vector.load %arg3[%c2_49, %c0_50, %c0_51] : memref<3x8x64xf32, #tpu.memory_space<vmem>>, vector<1x8x64xf32>
    %99 = vector.shape_cast %98 : vector<1x8x64xf32> to vector<8x64xf32>
    %100 = vector.extract_strided_slice %87 {offsets = [0, 0], sizes = [16, 8], strides = [1, 1]} : vector<16x16xf32> to vector<16x8xf32>
    %cst_52 = arith.constant dense<0.000000e+00> : vector<16x64xf32>
    %101 = tpu.matmul %100, %95, %cst_52 {dimension_numbers = #tpu.dot_dimension_numbers<[1], [0], [0], [1], [0, 0, 1, 1], [], []>} : vector<16x8xf32>, vector<8x64xf32>, vector<16x64xf32> -> vector<16x64xf32>
    %102 = vector.extract_strided_slice %89 {offsets = [0, 0], sizes = [16, 8], strides = [1, 1]} : vector<16x16xf32> to vector<16x8xf32>
    %cst_53 = arith.constant dense<0.000000e+00> : vector<16x64xf32>
    %103 = tpu.matmul %102, %97, %cst_53 {dimension_numbers = #tpu.dot_dimension_numbers<[1], [0], [0], [1], [0, 0, 1, 1], [], []>} : vector<16x8xf32>, vector<8x64xf32>, vector<16x64xf32> -> vector<16x64xf32>
    %104 = arith.addf %101, %103 : vector<16x64xf32>
    %105 = vector.extract_strided_slice %93 {offsets = [0, 0], sizes = [16, 8], strides = [1, 1]} : vector<16x16xf32> to vector<16x8xf32>
    %cst_54 = arith.constant dense<0.000000e+00> : vector<16x64xf32>
    %106 = tpu.matmul %105, %99, %cst_54 {dimension_numbers = #tpu.dot_dimension_numbers<[1], [0], [0], [1], [0, 0, 1, 1], [], []>} : vector<16x8xf32>, vector<8x64xf32>, vector<16x64xf32> -> vector<16x64xf32>
    %107 = arith.addf %104, %106 : vector<16x64xf32>
    %108 = vector.broadcast %88 : vector<1x64xf32> to vector<16x64xf32>
    %109 = arith.addf %107, %108 : vector<16x64xf32>
    %110 = vector.extract_strided_slice %87 {offsets = [0, 8], sizes = [16, 8], strides = [1, 1]} : vector<16x16xf32> to vector<16x8xf32>
    %cst_55 = arith.constant dense<0.000000e+00> : vector<16x64xf32>
    %111 = tpu.matmul %110, %95, %cst_55 {dimension_numbers = #tpu.dot_dimension_numbers<[1], [0], [0], [1], [0, 0, 1, 1], [], []>} : vector<16x8xf32>, vector<8x64xf32>, vector<16x64xf32> -> vector<16x64xf32>
    %112 = vector.extract_strided_slice %89 {offsets = [0, 8], sizes = [16, 8], strides = [1, 1]} : vector<16x16xf32> to vector<16x8xf32>
    %cst_56 = arith.constant dense<0.000000e+00> : vector<16x64xf32>
    %113 = tpu.matmul %112, %97, %cst_56 {dimension_numbers = #tpu.dot_dimension_numbers<[1], [0], [0], [1], [0, 0, 1, 1], [], []>} : vector<16x8xf32>, vector<8x64xf32>, vector<16x64xf32> -> vector<16x64xf32>
    %114 = arith.addf %111, %113 : vector<16x64xf32>
    %115 = vector.extract_strided_slice %93 {offsets = [0, 8], sizes = [16, 8], strides = [1, 1]} : vector<16x16xf32> to vector<16x8xf32>
    %cst_57 = arith.constant dense<0.000000e+00> : vector<16x64xf32>
    %116 = tpu.matmul %115, %99, %cst_57 {dimension_numbers = #tpu.dot_dimension_numbers<[1], [0], [0], [1], [0, 0, 1, 1], [], []>} : vector<16x8xf32>, vector<8x64xf32>, vector<16x64xf32> -> vector<16x64xf32>
    %117 = arith.addf %114, %116 : vector<16x64xf32>
    %118 = vector.broadcast %88 : vector<1x64xf32> to vector<16x64xf32>
    %119 = arith.addf %117, %118 : vector<16x64xf32>
    %120 = tpu.concatenate %109, %119 in 1 : vector<16x64xf32>, vector<16x64xf32> -> vector<16x128xf32>
    %c0_58 = arith.constant 0 : index
    %c0_59 = arith.constant 0 : index
    %121 = vector.load %arg6[%c0_58, %c0_59] : memref<16x128xf32, #tpu.memory_space<vmem>>, vector<16x128xf32>
    tpu.vector_store %arg6[%c0_58, %c0_59], %120 {strides = array<i32>} : memref<16x128xf32, #tpu.memory_space<vmem>>, vector<16x128xf32>,
    return
  }
}

</mosaic_0001>

<bundles_post_ra>
// kernel: tpu_custom_call.1
= control target key start
LH: loop header
LB: loop body
LE: loop exit
PB: predicated region body
PF: predicated region fallthrough
CT: control target
= control target key end

     0   :  { %vm44_vm0 = vcmask 130048   ;;  %s1954_s0 = inlined_call_operand.vmem [shape: f32[4,16,8], index: 0, kind: input, shape index: {}]   ;;  %s1955_s1 = inlined_call_operand.vmem [shape: f32[16,16], index: 1, kind: input, shape index: {}]   ;;  %s1956_s2 = inlined_call_operand.vmem [shape: f32[3,4,8], index: 2, kind: input, shape index: {}]   ;;  %s1957_s3 = inlined_call_operand.vmem [shape: f32[3,8,64], index: 3, kind: input, shape index: {}]   ;;  %s1958_s4 = inlined_call_operand.vmem [shape: f32[3,8], index: 4, kind: input, shape index: {}]   ;;  %s1959_s5 = inlined_call_operand.vmem [shape: f32[1,64], index: 5, kind: input, shape index: {}]   ;;  %s1960_s6 = inlined_call_operand.hbm [shape: f32[16,128], index: 6, kind: output, shape index: {}]  }
   0x1   :  { %v26_v0 = vld [vmem:[%s1954_s0] sm:$0xff]  ;;  %v27_v1 = vld [vmem:[%s1954_s0 + $0x8] sm:$0xff]  ;;  %v1503_v2 = vld [vmem:[%s1954_s0 + $0x10] sm:$0xff] }
   0x2   :  { %v1504_v3 = vld [vmem:[%s1954_s0 + $0x18] sm:$0xff]  ;;  %v31_v4 = vmax.f32 %v26_v0, %v1503_v2  ;;  %v1505_v5 = vld [vmem:[%s1954_s0 + $0x20] sm:$0xff]  ;;  %v1506_v6 = vld [vmem:[%s1954_s0 + $0x28] sm:$0xff] }
   0x3   :  { %v32_v7 = vmax.f32 %v27_v1, %v1504_v3  ;;  %v1507_v8 = vld [vmem:[%s1954_s0 + $0x30] sm:$0xff]  ;;  %v1821_v9 = vld [vmem:[%s1955_s1] sm:$0xff]  ;;  %v1508_v11 = vld [vmem:[%s1954_s0 + $0x38] sm:$0xff] }
   0x4   :  { %v36_v10 = vmax.f32 %v31_v4, %v1505_v5  ;;  %1608 = vmatprep.mubr.msk.f32.mxu0 %vm44_vm0, %v1821_v9  ;;  %1615 = vmatprep.mubr.msk.f32.mxu1 %vm44_vm0, %v1821_v9 }
   0x5   :  { %11 = vsyncpa [#allocation3], 0  ;;  %v37_v12 = vmax.f32 %v32_v7, %v1506_v6  ;;  %v1833_v16 = vld [vmem:[%s1955_s1 + $0x8] sm:$0xff]  ;;  %v1513_v17 = vld [vmem:[%s1956_s2 + $0x4] sm:$0xf]  ;;  %vm217_vm1 = vcmask 1043456   ;;  %v466_v35 = vlaneseq }
   0x6   :  { %v41_v13 = vmax.f32 %v36_v10, %v1507_v8  ;;  %s1756_s18 = smov 124   ;;  %v205_v18 = vld [vmem:[%s1956_s2] sm:$0xf]  ;;  %vm210_vm2 = vcmask 31744   ;;  %v1514_v22 = vld [vmem:[%s1956_s2 + $0x8] sm:$0xf] }
   0x7   :  { %v42_v14 = vmax.f32 %v37_v12, %v1508_v11  ;;  %v1882_v36 = vshrl.u32 %v466_v35, 7  ;;  %v1888_v38 = vld [vmem:[%s1958_s4] sm:$0x7]  ;;  %vm725_vm3 = vcmask 64512   ;;  %s1757_s4 = smov 8   ;;  %s1758_s27 = smov 120  }
   0x8   :  { %555 = vrot.lane.b32.xlu1 %v41_v13, %s1756_s18  ;;  %s1759_s7 = smov 64   ;;  %vm1482_vm4 = vcmask 523264   ;;  %s1760_s8 = smov [#allocation2]  }
   0x9   :  { %v1692_v15 = vpack.c.bf16 %v42_v14, %v41_v13  ;;  %v468_v37 = vsub.s32 0, %v1882_v36  ;;  %v786_v35 = vsub.s32 2, %v1882_v36  ;;  %s1492_s9 = sshll.u32 %s1760_s8, 4  ;;  %s1493_s9 = int_to_ptr.vmem [resolvable:$true] %s1492_s9 }
   0xa   :  { %p1737_p1 = scmp.lt.s32.totalorder %s1493_s9, %s1493_s9 }
   0xb   :  { %1693 = vmatprep.subr.bf16.mxu0 %v1692_v15  ;;  %v469_v39 = vrot.slane %v1888_v38, %v468_v37 }
   0xc   :  { %1695 = vmatpush3.bf16.msra.mxu0 %v1692_v15  ;;  %557 = vrot.lane.b32.xlu1 %v42_v14, %s1756_s18 }
   0xd   :  { %1618 = vmatprep.subr.msk.mxu0 %vm217_vm1, %v1513_v17 }
   0xf   :  { %1609 = vmatmul.mubr.msk.f32.vlgmr.msra.gmra.mrb[0].mxu0 %vm44_vm0, %v1833_v16 }
  0x10   :  { %1619 = vmatpush3.msk.msra.mxu0 %vm217_vm1, %v1513_v17 }
  0x11   :  { %1623 = vmatprep.subr.msk.mxu0 %vm217_vm1, %v205_v18 }
  0x7a   :  { %v556_v24 = vpop.permute.xlu1 %555 }
  0x7e   :  { %v558_v26 = vpop.permute.xlu1 %557 }
  0xe2   :  { %v1610_v19 = vpop.f32.mrb[0].mxu0 }
  0xe3   :  { %v117_v20 = vpop.f32.mrb[1].mxu0 }
  0xe4   :  { %472 = vrot.lane.b32.xlu0 %v117_v20, %s1756_s18  ;;  %1620 = vmatprep.mubr.msk.f32.mxu0 %vm210_vm2, %v117_v20  ;;  %v1696_v21 = vpack.c.bf16 %v1610_v19, %v117_v20 }
  0xe5   :  { %1621 = vmatmul.mubr.msk.f32.vlgmr.msra.gmra.mrb[2].mxu0 %vm210_vm2, %v1610_v19 }
  0xe6   :  { %1697 = vmatprep.subr.bf16.mxu1 %v1696_v21  ;;  %1624 = vmatpush3.msk.msra.mxu0 %vm217_vm1, %v205_v18 }
  0xe7   :  { %1699 = vmatpush3.bf16.msra.mxu1 %v1696_v21  ;;  %1625 = vmatprep.mubr.msk.f32.mxu0 %vm210_vm2, %v41_v13 }
  0xe8   :  { %474 = vrot.lane.b32.xlu0 %v1610_v19, %s1756_s18  ;;  %1633 = vmatprep.subr.msk.mxu1 %vm217_vm1, %v1513_v17 }
  0xe9   :  { %1628 = vmatprep.subr.msk.mxu0 %vm217_vm1, %v1514_v22 }
  0xea   :  { %1616 = vmatmul.mubr.msk.f32.vlgmr.msra.gmra.mrb[0].mxu1 %vm44_vm0, %v1833_v16 }
  0xeb   :  { %1634 = vmatpush3.msk.msra.mxu1 %vm217_vm1, %v1513_v17 }
  0xec   :  { %1638 = vmatprep.subr.msk.mxu1 %vm217_vm1, %v205_v18 }
  0xed   :  { %1626 = vmatmul.mubr.msk.f32.vlgmr.msra.gmra.mrb[2].mxu0 %vm210_vm2, %v42_v14 }
  0xee   :  { %1629 = vmatpush3.msk.msra.mxu0 %vm217_vm1, %v1514_v22 }
 0x156   :  { %v473_v23 = vpop.permute.xlu0 %472 }
 0x157   :  { %1635 = vmatprep.mubr.msk.f32.mxu1 %vm210_vm2, %v473_v23 }
 0x15a   :  { %v475_v25 = vpop.permute.xlu0 %474 }
 0x15b   :  { %1636 = vmatmul.mubr.msk.f32.vlgmr.msra.gmra.mrb[2].mxu1 %vm210_vm2, %v475_v25 }
 0x15c   :  { %1639 = vmatpush3.msk.msra.mxu1 %vm217_vm1, %v205_v18  ;;  %1640 = vmatprep.mubr.msk.f32.mxu1 %vm210_vm2, %v556_v24 }
 0x15d   :  { %1643 = vmatprep.subr.msk.mxu1 %vm217_vm1, %v1514_v22 }
 0x163   :  { %1641 = vmatmul.mubr.msk.f32.vlgmr.msra.gmra.mrb[2].mxu1 %vm210_vm2, %v558_v26 }
 0x164   :  { %1644 = vmatpush3.msk.msra.mxu1 %vm217_vm1, %v1514_v22 }
 0x1bd   :  { %v1617_v27 = vpop.f32.mrb[0].mxu1 }
 0x1be   :  { %v202_v28 = vmul.f32 2.0, %v1617_v27  ;;  %v192_v29 = vpop.f32.mrb[1].mxu1 }
 0x1bf   :  { %v201_v30 = vmul.f32 2.0, %v192_v29 }
 0x1c0   :  { %v204_v31 = vsub.f32 %v202_v28, %v42_v14 }
 0x1c1   :  { %v203_v32 = vsub.f32 %v201_v30, %v41_v13 }
 0x1c2   :  { %640 = vrot.lane.b32.xlu1 %v204_v31, %s1756_s18 }
 0x1c3   :  { %638 = vrot.lane.b32.xlu0 %v203_v32, %s1756_s18  ;;  %1630 = vmatprep.mubr.msk.f32.mxu0 %vm210_vm2, %v203_v32 }
 0x1c4   :  { %1631 = vmatmul.mubr.msk.f32.vlgmr.msra.gmra.mrb[2].mxu0 %vm210_vm2, %v204_v31 }
 0x1c5   :  { %1652 = vmatprep.mubr.msk.f32.mxu0 %vm44_vm0, %v1821_v9 }
 0x234   :  { %v641_v34 = vpop.permute.xlu1 %640 }
 0x235   :  { %v639_v33 = vpop.permute.xlu0 %638 }
 0x236   :  { %1645 = vmatprep.mubr.msk.f32.mxu1 %vm210_vm2, %v639_v33 }
 0x237   :  { %1646 = vmatmul.mubr.msk.f32.vlgmr.msra.gmra.mrb[2].mxu1 %vm210_vm2, %v641_v34  ;;  %v780_v34 = vsub.s32 1, %v1882_v36 }
 0x238   :  { %1659 = vmatprep.mubr.msk.f32.mxu1 %vm44_vm0, %v1821_v9 }
 0x297   :  { %v1632_v40 = vpop.f32.mrb[2].mxu0 }
 0x298   :  { %v471_v41 = vadd.f32 %v1632_v40, %v469_v39  ;;  %v455_v42 = vpop.f32.mrb[3].mxu0 }
 0x299   :  { %v470_v43 = vadd.f32 %v469_v39, %v455_v42 }
 0x29a   :  { %v727_v44 = vsel %vm725_vm3, %v471_v41, 0.0 }
 0x29b   :  { %v726_v45 = vsel %vm725_vm3, %v470_v43, 0.0 }
 0x29c   :  { %v728_v46 = vadd.f32 %v727_v44, %v726_v45 }
 0x29e   :  { %v729_v47 = vrot.slane %v728_v46, 4 }
 0x2a0   :  { %v730_v49 = vadd.f32 %v729_v47, %v728_v46 }
 0x2a2   :  { %v731_v55 = vrot.slane %v730_v49, 2 }
 0x2a4   :  { %v732_v58 = vadd.f32 %v731_v55, %v730_v49 }
 0x2a6   :  { %v733_v61 = vrot.slane %v732_v58, 1 }
 0x2a8   :  { %v734_v0 = vadd.f32 %v733_v61, %v732_v58  ;;  %v963_v58 = vld [vmem:[%s1957_s3] sm:$0xff] }
 0x30a   :  { %v1647_v48 = vpop.f32.mrb[2].mxu1 }
 0x30b   :  { %v724_v50 = vadd.f32 %v1647_v48, %v469_v39  ;;  %v712_v51 = vpop.f32.mrb[3].mxu1 }
 0x30c   :  { %v723_v52 = vadd.f32 %v712_v51, %v469_v39 }
 0x30d   :  { %v736_v53 = vsel %vm725_vm3, %v724_v50, 0.0 }
 0x30e   :  { %v735_v54 = vsel %vm725_vm3, %v723_v52, 0.0 }
 0x30f   :  { %v737_v56 = vadd.f32 %v736_v53, %v735_v54 }
 0x311   :  { %v738_v57 = vrot.slane %v737_v56, 4 }
 0x313   :  { %v739_v59 = vadd.f32 %v738_v57, %v737_v56  ;;  %v1537_v57 = vld [vmem:[%s1957_s3 + $0x8] sm:$0xff] }
 0x315   :  { %v740_v60 = vrot.slane %v739_v59, 2 }
 0x317   :  { %v741_v62 = vadd.f32 %v740_v60, %v739_v59 }
 0x319   :  { %v742_v63 = vrot.slane %v741_v62, 1 }
 0x31b   :  { %v743_v1 = vadd.f32 %v742_v63, %v741_v62  ;;  %v1538_v62 = vld [vmem:[%s1957_s3 + $0x10] sm:$0xff] }
 0x31d   :  { %v744_v2 = vadd.f32 %v743_v1, %v734_v0 }
 0x31f   :  { %v746_v3 = vmul.f32 0.03125, %v744_v2 }
 0x321   :  { %v747_v4 = vsub.f32 %v470_v43, %v746_v3  ;;  %v748_v5 = vsub.f32 %v471_v41, %v746_v3  ;;  %v760_v6 = vsub.f32 %v723_v52, %v746_v3  ;;  %v761_v7 = vsub.f32 %v724_v50, %v746_v3 }
 0x322   :  { %v787_v41 = vrot.slane %v1888_v38, %v786_v35 }
 0x323   :  { %v749_v8 = vmul.f32 %v747_v4, %v747_v4  ;;  %v750_v9 = vmul.f32 %v748_v5, %v748_v5  ;;  %v762_v10 = vmul.f32 %v760_v6, %v760_v6  ;;  %v763_v11 = vmul.f32 %v761_v7, %v761_v7 }
 0x325   :  { %v751_v12 = vsel %vm725_vm3, %v749_v8, 0.0  ;;  %v752_v13 = vsel %vm725_vm3, %v750_v9, 0.0  ;;  %v764_v14 = vsel %vm725_vm3, %v762_v10, 0.0  ;;  %v765_v15 = vsel %vm725_vm3, %v763_v11, 0.0 }
 0x326   :  { %v753_v17 = vadd.f32 %v752_v13, %v751_v12  ;;  %v766_v18 = vadd.f32 %v765_v15, %v764_v14  ;;  %v1545_v12 = vld [vmem:[%s1959_s5] ss:$0 sm:$0xff]  ;;  %s1732_s5 = scalar_lea.vmem %s1493_s9, 256 }
 0x327   :  { %p1733_p0 = scmp.ne.s32.totalorder %s1493_s9, %s1732_s5  ;;  %p1738_p2 = scmp.lt.s32.totalorder %s1732_s5, %s1732_s5 }
 0x328   :  { %v754_v19 = vrot.slane %v753_v17, 4  ;;  %v767_v20 = vrot.slane %v766_v18, 4 }
 0x329   :  { %p1739_p3 = por %p1738_p2, %p1737_p1 }
 0x32a   :  { %v755_v21 = vadd.f32 %v754_v19, %v753_v17  ;;  %v768_v22 = vadd.f32 %v767_v20, %v766_v18 }
 0x32b   :  { %p1740_p4 = pnand %p1739_p3, %p1733_p0 }
 0x32c   :  { %v756_v23 = vrot.slane %v755_v21, 2  ;;  %v769_v24 = vrot.slane %v768_v22, 2 }
 0x32e   :  { %v757_v25 = vadd.f32 %v756_v23, %v755_v21  ;;  %v770_v26 = vadd.f32 %v769_v24, %v768_v22 }
 0x330   :  { %v758_v27 = vrot.slane %v757_v25, 1  ;;  %v771_v28 = vrot.slane %v770_v26, 1 }
 0x332   :  { %v759_v29 = vadd.f32 %v758_v27, %v757_v25  ;;  %v772_v30 = vadd.f32 %v771_v28, %v770_v26 }
 0x334   :  { %v773_v31 = vadd.f32 %v772_v30, %v759_v29 }
 0x336   :  { %v774_v32 = vmul.f32 0.03125, %v773_v31 }
 0x338   :  { %v775_v33 = vadd.f32 1e-05, %v774_v32 }
 0x33a   :  { %1730 = vrsqrt.f32 %v775_v33 }
 0x344   :  { %v1731_v37 = vpop.eup %1730 }
 0x345   :  { %v777_v39 = vmul.f32 %v1731_v37, %v1888_v38 }
 0x347   :  { %v781_v40 = vrot.slane %v777_v39, %v780_v34 }
 0x349   :  { %v792_v42 = vmul.f32 %v781_v40, %v760_v6  ;;  %v793_v43 = vmul.f32 %v781_v40, %v761_v7  ;;  %v783_v44 = vmul.f32 %v781_v40, %v748_v5  ;;  %v782_v45 = vmul.f32 %v781_v40, %v747_v4 }
 0x34b   :  { %v795_v46 = vadd.f32 %v793_v43, %v787_v41  ;;  %v794_v47 = vadd.f32 %v792_v42, %v787_v41  ;;  %v789_v48 = vadd.f32 %v787_v41, %v783_v44  ;;  %v788_v49 = vadd.f32 %v787_v41, %v782_v45 }
 0x34d   :  { %v797_v50 = vmax.f32 %v795_v46, 0.0  ;;  %v796_v51 = vmax.f32 %v794_v47, 0.0  ;;  %v791_v36 = vmax.f32 %v789_v48, 0.0  ;;  %v790_v52 = vmax.f32 %v788_v49, 0.0 }
 0x34f   :  { %802 = vrot.lane.b32.xlu1 %v797_v50, %s1757_s4  ;;  %800 = vrot.lane.b32.xlu0 %v796_v51, %s1757_s4 }
 0x3c1   :  { %v803_v53 = vpop.permute.xlu1 %802  ;;  %v801_v54 = vpop.permute.xlu0 %800 }
 0x3c2   :  { %v807_v38 = vsel %vm725_vm3, %v791_v36, %v803_v53  ;;  %v806_v55 = vsel %vm725_vm3, %v790_v52, %v801_v54 }
 0x3c3   :  { %v1700_v56 = vpack.c.bf16 %v807_v38, %v806_v55 }
 0x3c5   :  { %1701 = vmatprep.subr.bf16.mxu0 %v1700_v56 }
 0x3c6   :  { %1703 = vmatpush3.bf16.msra.mxu0 %v1700_v56 }
 0x3c7   :  { %1662 = vmatprep.subr.mxu0 %v1537_v57 }
 0x3c9   :  { %1653 = vmatmul.mubr.msk.f32.vlgmr.msra.gmra.mrb[4].mxu0 %vm44_vm0, %v1833_v16 }
 0x3ca   :  { %1663 = vmatpush3.msra.mxu0 %v1537_v57 }
 0x3cb   :  { %1667 = vmatprep.subr.mxu0 %v963_v58 }
 0x49c   :  { %v1654_v59 = vpop.f32.mrb[4].mxu0 }
 0x49d   :  { %1223 = vrot.lane.b32.xlu1 %v1654_v59, %s1758_s27  ;;  %v875_v60 = vpop.f32.mrb[5].mxu0 }
 0x49e   :  { %v1704_v61 = vpack.c.bf16 %v1654_v59, %v875_v60  ;;  %1221 = vrot.lane.b32.xlu0 %v875_v60, %s1758_s27  ;;  %1664 = vmatprep.mubr.msk.f32.mxu0 %vm725_vm3, %v875_v60 }
 0x49f   :  { %1665 = vmatmul.mubr.msk.f32.vlgmr.msra.gmra.mrb[6].mxu0 %vm725_vm3, %v1654_v59 }
 0x4a0   :  { %1705 = vmatprep.subr.bf16.mxu1 %v1704_v61  ;;  %1669 = vmatprep.mubr.msk.f32.mxu0 %vm725_vm3, %v806_v55 }
 0x4a1   :  { %1306 = vrot.lane.b32.xlu1 %v807_v38, %s1758_s27  ;;  %1707 = vmatpush3.bf16.msra.mxu1 %v1704_v61 }
 0x4a2   :  { %1304 = vrot.lane.b32.xlu0 %v806_v55, %s1758_s27  ;;  %1668 = vmatpush3.msra.mxu0 %v963_v58 }
 0x4a3   :  { %1677 = vmatprep.subr.mxu1 %v1537_v57  ;;  %1672 = vmatprep.subr.mxu0 %v1538_v62 }
 0x4a4   :  { %1660 = vmatmul.mubr.msk.f32.vlgmr.msra.gmra.mrb[4].mxu1 %vm44_vm0, %v1833_v16 }
 0x4a5   :  { %1678 = vmatpush3.msra.mxu1 %v1537_v57 }
 0x4a6   :  { %1682 = vmatprep.subr.mxu1 %v963_v58 }
 0x4a7   :  { %1670 = vmatmul.mubr.msk.f32.vlgmr.msra.gmra.mrb[6].mxu0 %vm725_vm3, %v807_v38 }
 0x4a8   :  { %1673 = vmatpush3.msra.mxu0 %v1538_v62 }
 0x50f   :  { %v1224_v0 = vpop.permute.xlu1 %1223 }
 0x510   :  { %v1222_v63 = vpop.permute.xlu0 %1221 }
 0x511   :  { %1679 = vmatprep.mubr.msk.f32.mxu1 %vm725_vm3, %v1222_v63 }
 0x512   :  { %1680 = vmatmul.mubr.msk.f32.vlgmr.msra.gmra.mrb[6].mxu1 %vm725_vm3, %v1224_v0 }
 0x513   :  { %1683 = vmatpush3.msra.mxu1 %v963_v58  ;;  %v1307_v16 = vpop.permute.xlu1 %1306 }
 0x514   :  { %v1305_v1 = vpop.permute.xlu0 %1304  ;;  %1687 = vmatprep.subr.mxu1 %v1538_v62 }
 0x515   :  { %1684 = vmatprep.mubr.msk.f32.mxu1 %vm725_vm3, %v1305_v1 }
 0x51a   :  { %1685 = vmatmul.mubr.msk.f32.vlgmr.msra.gmra.mrb[6].mxu1 %vm725_vm3, %v1307_v16 }
 0x51b   :  { %1688 = vmatpush3.msra.mxu1 %v1538_v62 }
 0x577   :  { %v1661_v2 = vpop.f32.mrb[4].mxu1 }
 0x578   :  { %v960_v3 = vmul.f32 2.0, %v1661_v2  ;;  %v950_v4 = vpop.f32.mrb[5].mxu1 }
 0x579   :  { %v959_v5 = vmul.f32 2.0, %v950_v4 }
 0x57a   :  { %v962_v6 = vsub.f32 %v960_v3, %v807_v38 }
 0x57b   :  { %v961_v7 = vsub.f32 %v959_v5, %v806_v55 }
 0x57c   :  { %1389 = vrot.lane.b32.xlu1 %v962_v6, %s1758_s27 }
 0x57d   :  { %1387 = vrot.lane.b32.xlu0 %v961_v7, %s1758_s27  ;;  %1674 = vmatprep.mubr.msk.f32.mxu0 %vm725_vm3, %v961_v7 }
 0x57e   :  { %1675 = vmatmul.mubr.msk.f32.vlgmr.msra.gmra.mrb[6].mxu0 %vm725_vm3, %v962_v6 }
 0x5ee   :  { %v1390_v9 = vpop.permute.xlu1 %1389 }
 0x5ef   :  { %v1388_v8 = vpop.permute.xlu0 %1387 }
 0x5f0   :  { %1689 = vmatprep.mubr.msk.f32.mxu1 %vm725_vm3, %v1388_v8 }
 0x5f1   :  { %1690 = vmatmul.mubr.msk.f32.vlgmr.msra.gmra.mrb[6].mxu1 %vm725_vm3, %v1390_v9 }
 0x651   :  { %v1676_v10 = vpop.f32.mrb[6].mxu0 }
 0x652   :  { %v1202_v11 = vpop.f32.mrb[7].mxu0  ;;  %v1220_v18 = vadd.f32 %v1676_v10, %v1545_v12 }
 0x653   :  { %v1219_v19 = vadd.f32 %v1545_v12, %v1202_v11 }
 0x6c4   :  { %v1691_v13 = vpop.f32.mrb[6].mxu1 }
 0x6c5   :  { %v1473_v14 = vadd.f32 %v1691_v13, %v1545_v12  ;;  %v1461_v15 = vpop.f32.mrb[7].mxu1 }
 0x6c6   :  { %v1472_v17 = vadd.f32 %v1545_v12, %v1461_v15 }
 0x6c7   :  { %1478 = vrot.lane.b32.xlu1 %v1473_v14, %s1759_s7 }
 0x6c8   :  { %1476 = vrot.lane.b32.xlu0 %v1472_v17, %s1759_s7 }
 0x739   :  { %v1479_v20 = vpop.permute.xlu1 %1478 }
 0x73a   :  { %v1484_v21 = vsel %vm1482_vm4, %v1220_v18, %v1479_v20  ;;  %v1477_v22 = vpop.permute.xlu0 %1476 }
 0x73b   :  { %1486 = vst [vmem:[#allocation2 + $0x8] sm:$0xff] %v1484_v21  ;;  %v1483_v23 = vsel %vm1482_vm4, %v1219_v19, %v1477_v22 }
 0x73c   :  { %1485 = vst [vmem:[#allocation2] sm:$0xff] %v1483_v23 }
 0x73d   :  { %1743 = shalt.err (!%p1740_p4)
}
 0x73e   :  { %s1744_s12 = scalar_lea.hbm %s1960_s6, 256 }
 0x73f   :  { %p1745_p5 = scmp.ne.s32.totalorder %s1960_s6, %s1744_s12  ;;  %p1748_p6 = scmp.lt.u32.totalorder %s1744_s12, %s1960_s6 }
 0x741   :  { %p1750_p7 = pnand %p1748_p6, %p1745_p5 }
 0x743   :  { %1753 = shalt.err (!%p1750_p7)
}
 0x744   :  { %s1761_s0 = smov 128  }
 0x745   :  { %1498 = dma.vmem_to_hbm [thread:$0]  %s1493_s9, 256, %s1960_s6, [#allocation3], %s1761_s0, %s1761_s0, %s1757_s4  }
 0x746   :  { %1754 = dma.done.wait [#allocation3], 256  }
 0x747   :  { %1755 = vsyncadd [#allocation3], 4294967040 }
 0x748   :  { %1502 = vsyncpa [#allocation3], 1 }

</bundles_post_ra>
